<compile_context>
chip_gen: v5e
topology: v5e:2x2
jax: 0.10.0
libtpu: 0.0.40
codegen_flags: <defaults>
</compile_context>

<pallas_src>
import functools

import jax
import jax.numpy as jnp
import numpy as np
from jax import lax
from jax.experimental import pallas as pl
from jax.experimental.pallas import tpu as pltpu


# ---------------------------------------------------------------------------
# config (LaneGCN-style defaults)
# ---------------------------------------------------------------------------
CONFIG = dict(
    num_mods=6,
    num_preds=30,     # final-timestep index 29 is hardcoded in the reference
    cls_th=2.0,
    cls_ignore=0.2,
    mgn=0.2,
    cls_coef=1.0,
    reg_coef=1.0,
)
FINAL_T = 29  # hardcoded in the PyTorch forward (reg[..., 29, :])


def _round_up(x, m):
    return ((x + m - 1) // m) * m


def _slab_offsets(m, tt):
    """Lane offsets of the packed per-row slab.

    Lane-tile 0:  gt (2T lanes, interleaved x,y) | has-mask (2T lanes) | pad
    Lane-tile 1+: cls (M) | dx (M) | dy (M) | row_mask (1)
    """
    assert 2 * tt <= 128, "slab layout requires 4*T <= 128"
    assert 3 * m + 1 <= 128, "slab layout requires 3*M + 1 <= 128"
    gt_off, has_off = 0, tt
    cls_off = 128
    dx_off = cls_off + m
    dy_off = cls_off + 2 * m
    rm_off = cls_off + 3 * m
    slab_w = rm_off + 1
    return gt_off, has_off, cls_off, dx_off, dy_off, rm_off, slab_w


# ---------------------------------------------------------------------------
# Pallas kernel: one B-block per grid step, writes a (1, 8, 128) partial tile
# ---------------------------------------------------------------------------
def _predloss_kernel(slab_ref, reg_ref, out_ref, *,
                     cls_th, cls_ignore, mgn_c, cls_coef):
    TB, M, TT = reg_ref.shape
    f32 = jnp.float32
    gt_off, has_off, cls_off, dx_off, dy_off, rm_off, _ = _slab_offsets(M, TT)

    slab = slab_ref[...]                       # [TB, SLAB_W]
    reg = reg_ref[...]                         # [TB, M, 2T] interleaved (x,y) per t

    gt2 = slab[:, gt_off:gt_off + TT]          # [TB, 2T]  GT traj, interleaved
    has2 = slab[:, has_off:has_off + TT]       # [TB, 2T]  0/1 validity, row-masked
    cls = slab[:, cls_off:cls_off + M]         # [TB, M]   mode scores
    dx = slab[:, dx_off:dx_off + M]            # [TB, M]   endpoint dx (pre-differenced)
    dy = slab[:, dy_off:dy_off + M]            # [TB, M]   endpoint dy (pre-differenced)
    rowm = slab[:, rm_off:rm_off + 1]          # [TB, 1]   row filter 0/1

    # ---- closest mode vs. GT endpoint (timestep 29) -------------------------
    dist = jnp.sqrt(dx * dx + dy * dy)                             # [TB, M]
    min_dist = jnp.min(dist, axis=1, keepdims=True)                # [TB, 1]
    m_iota = lax.broadcasted_iota(jnp.int32, (TB, M), 1)
    min_idcs = jnp.min(jnp.where(dist == min_dist, m_iota, M),
                       axis=1, keepdims=True)                      # first index on ties
    onehot = m_iota == min_idcs                                    # [TB, M] bool

    # ---- classification margin loss (per-block partial, linear in sums) -----
    row_ok = rowm > 0.5                                            # [TB, 1] bool
    cls_min = jnp.sum(jnp.where(onehot, cls, 0.0), axis=1, keepdims=True)
    mgn = cls_min - cls                                            # [TB, M]
    sel = jnp.logical_and(
        jnp.logical_and(min_dist < cls_th, (dist - min_dist) > cls_ignore),
        row_ok)
    mmask = jnp.logical_and(sel, mgn < mgn_c)                      # [TB, M] bool
    num_cls_p = jnp.sum(mmask.astype(f32))
    cls_loss_p = cls_coef * (mgn_c * num_cls_p
                             - jnp.sum(jnp.where(mmask, mgn, 0.0)))

    # ---- best-mode SmoothL1 (beta=1) partial sums ----------------------------
    d = reg - gt2[:, None, :]                                      # [TB, M, 2T]
    a = jnp.abs(d)
    sl1 = jnp.where(a < 1.0, 0.5 * a * a, a - 0.5)                 # [TB, M, 2T]
    per_mode = jnp.sum(sl1 * has2[:, None, :], axis=2)             # [TB, M]
    reg_sum_p = jnp.sum(jnp.where(onehot, per_mode, 0.0))
    num_reg_p = 0.5 * jnp.sum(has2)                                # each t counted twice

    # ---- pack the four partial scalars into a lane-dense (1,8,128) tile ------
    lane = lax.broadcasted_iota(jnp.int32, (8, 128), 1)
    sub = lax.broadcasted_iota(jnp.int32, (8, 128), 0)
    vals = jnp.where(lane == 0, cls_loss_p,
           jnp.where(lane == 1, num_cls_p,
           jnp.where(lane == 2, reg_sum_p,
           jnp.where(lane == 3, num_reg_p, 0.0))))
    out_ref[...] = jnp.where(sub == 0, vals, 0.0)[None, :, :].astype(f32)


# ---------------------------------------------------------------------------
# wrapper: list-concat glue + packing + B-tiled pallas_call + partial reduce
# ---------------------------------------------------------------------------
def pred_loss(cls_list, reg_list, gt_preds_list, has_preds_list, config=CONFIG):
    # torch.cat glue
    if all(c.shape == cls_list[0].shape for c in cls_list):
        cls = jnp.stack(cls_list, 0)[:, 1, :].astype(jnp.float32)            # [B, M]
    else:
        cls = jnp.concatenate([c[1:2, :] for c in cls_list], 0).astype(jnp.float32)
    reg = jnp.concatenate(reg_list, 0).astype(jnp.float32)                   # [B, M, T, 2]
    gt = jnp.concatenate(gt_preds_list, 0).astype(jnp.float32)               # [B, T, 2]
    has = jnp.concatenate(has_preds_list, 0).astype(jnp.float32)             # [B, T]

    B, M, T, _ = reg.shape
    TT = 2 * T
    assert T > FINAL_T, "config expects >= 30 prediction steps (index 29 hardcoded)"
    _, _, _, _, _, _, SLAB_W = _slab_offsets(M, TT)

    # Natural interleaved flatten: free reshapes, NO transpose of the big tensor.
    reg2 = reg.reshape(B, M, TT)                                             # [B, M, 2T]
    gt2 = gt.reshape(B, TT)                                                  # [B, 2T]

    # Row filter:  max_t( has + 0.1*t/T ) > 1.0
    last = has + 0.1 * jnp.arange(T, dtype=jnp.float32) / float(T)
    row_mask = (jnp.max(last, axis=1, keepdims=True) > 1.0).astype(jnp.float32)  # [B,1]

    # 2T-wide validity mask (per-timestep value repeated for x and y), row-masked.
    has2 = jnp.repeat(has, 2, axis=1) * row_mask                             # [B, 2T]

    # Pre-differenced final-timestep endpoints.
    d_end = reg[:, :, FINAL_T, :] - gt[:, None, FINAL_T, :]                  # [B, M, 2]

    pad = jnp.zeros((B, 128 - 2 * TT), jnp.float32)
    slab = jnp.concatenate(
        [gt2, has2, pad, cls, d_end[..., 0], d_end[..., 1], row_mask], axis=1)  # [B, SLAB_W]

    # ---- B tiling (rows/block multiple of 8; modest so v7x 64 MiB VMEM is fine:
    #      reg block pads to 4 KiB/row -> TB=512 => 2 MiB/buffer, x2 pipeline buffers)
    TB = 512 if B >= 512 else _round_up(B, 8)
    B_pad = _round_up(B, TB)
    NB = B_pad // TB
    if B_pad != B:  # zero-padded rows contribute exactly 0 to every partial sum
        slab = jnp.pad(slab, ((0, B_pad - B), (0, 0)))
        reg2 = jnp.pad(reg2, ((0, B_pad - B), (0, 0), (0, 0)))

    kernel = functools.partial(
        _predloss_kernel,
        cls_th=float(config['cls_th']),
        cls_ignore=float(config['cls_ignore']),
        mgn_c=float(config['mgn']),
        cls_coef=float(config['cls_coef']),
    )

    out = pl.pallas_call(
        kernel,
        out_shape=jax.ShapeDtypeStruct((NB, 8, 128), jnp.float32),
        grid=(NB,),
        in_specs=[
            pl.BlockSpec((TB, SLAB_W), lambda i: (i, 0)),
            # NOTE: on v5e, if DMA is still exposed at ~0.8 TB/s HBM, this spec can
            # take pipeline_mode=pl.Buffered(3) for a deeper pipeline on the big input.
            pl.BlockSpec((TB, M, TT), lambda i: (i, 0, 0)),
        ],
        out_specs=pl.BlockSpec((1, 8, 128), lambda i: (i, 0, 0)),
        compiler_params=pltpu.CompilerParams(
            dimension_semantics=("parallel",),          # shards blocks across v7x TCs
            vmem_limit_bytes=32 * 1024 * 1024),
    )(slab, reg2)

    # Tiny partial reduce in the wrapper (only sublane 0 of each block is nonzero).
    totals = jnp.sum(out, axis=(0, 1))                                       # [128]
    num_reg = totals[3]
    reg_loss = float(config['reg_coef']) * totals[2] / (2.0 * jnp.maximum(num_reg, 1.0))
    # return device scalars; no blocking host syncs
    return dict(cls_loss=totals[0], num_cls=totals[1],
                reg_loss=reg_loss, num_reg=num_reg)


# ---------------------------------------------------------------------------
# pure-JAX reference (mirrors the PyTorch forward; all rows pass the mask)
# ---------------------------------------------------------------------------
def pred_loss_ref(cls_list, reg_list, gt_preds_list, has_preds_list, config=CONFIG):
    cls = jnp.concatenate([c[1:2, :] for c in cls_list], 0).astype(jnp.float32)
    reg = jnp.concatenate(reg_list, 0).astype(jnp.float32)
    gt = jnp.concatenate(gt_preds_list, 0).astype(jnp.float32)
    has = jnp.concatenate(has_preds_list, 0).astype(jnp.float32)
    B, M, T, _ = reg.shape

    last = has + 0.1 * jnp.arange(T, dtype=jnp.float32) / float(T)
    row_mask = (jnp.max(last, axis=1) > 1.0).astype(jnp.float32)        # assumed all 1

    diff = reg[:, :, FINAL_T, :] - gt[:, None, FINAL_T, :]
    dist = jnp.sqrt(jnp.sum(diff * diff, axis=2))                       # [B, M]
    min_dist = jnp.min(dist, axis=1)
    min_idcs = jnp.argmin(dist, axis=1)
    rows = jnp.arange(B)

    mgn = cls[rows, min_idcs][:, None] - cls
    mask0 = (min_dist < config['cls_th'])[:, None]
    mask1 = (dist - min_dist[:, None]) > config['cls_ignore']
    sel = mask0 & mask1 & (row_mask[:, None] > 0)
    mmask = sel & (mgn < config['mgn'])
    num_cls = jnp.sum(mmask)
    cls_loss = config['cls_coef'] * (
        config['mgn'] * num_cls - jnp.sum(jnp.where(mmask, mgn, 0.0)))

    reg_best = reg[rows, min_idcs]                                      # [B, T, 2]
    d = reg_best - gt
    a = jnp.abs(d)
    sl1 = jnp.where(a < 1.0, 0.5 * a * a, a - 0.5)
    w = (has * row_mask[:, None])[:, :, None]
    num_reg = jnp.sum(has * row_mask[:, None])
    reg_loss = config['reg_coef'] * jnp.sum(sl1 * w) / (2.0 * num_reg)
    return dict(cls_loss=cls_loss, num_cls=num_cls,
                reg_loss=reg_loss, num_reg=num_reg)


# ---------------------------------------------------------------------------
if __name__ == "__main__":
    key = jax.random.PRNGKey(0)
    B = 4
    M = CONFIG['num_mods']
    T = CONFIG['num_preds']

    cls_list, reg_list, gt_list, has_list = [], [], [], []
    for i in range(B):
        key, k1, k2, k3, k4 = jax.random.split(key, 5)
        cls_i = jax.random.normal(k1, (2, M), jnp.float32)        # >=2 agents, row 1 used
        reg_i = 2.0 * jax.random.normal(k2, (1, M, T, 2), jnp.float32)
        gt_i = 2.0 * jax.random.normal(k3, (1, T, 2), jnp.float32)
        has_i = (jax.random.uniform(k4, (1, T)) > 0.2)
        has_i = has_i.at[:, -1].set(True)                         # row passes the mask
        cls_list.append(cls_i)
        reg_list.append(reg_i)
        gt_list.append(gt_i)
        has_list.append(has_i)

    out = pred_loss(cls_list, reg_list, gt_list, has_list, CONFIG)
    jax.block_until_ready(out['cls_loss'])
    jax.block_until_ready(out['reg_loss'])

    ref = pred_loss_ref(cls_list, reg_list, gt_list, has_list, CONFIG)
    np.testing.assert_allclose(np.asarray(out['cls_loss']),
                               np.asarray(ref['cls_loss']), rtol=1e-5, atol=1e-5)
    np.testing.assert_allclose(np.asarray(out['reg_loss']),
                               np.asarray(ref['reg_loss']), rtol=1e-5, atol=1e-5)
    assert int(np.asarray(out['num_cls'])) == int(np.asarray(ref['num_cls']))
    assert int(round(float(np.asarray(out['num_reg'])))) == int(np.asarray(ref['num_reg']))

    print("KERNEL_OK")
</pallas_src>

<mosaic_0001>
module attributes {stable_mosaic.version = 11 : i64} {
  func.func @_predloss_kernel(%arg0: i32, %arg1: memref<8x147xf32, #tpu.memory_space<vmem>>, %arg2: memref<8x6x60xf32, #tpu.memory_space<vmem>>, %arg3: memref<1x8x128xf32, #tpu.memory_space<vmem>>) attributes {dimension_semantics = [#tpu.dimension_semantics<parallel>], iteration_bounds = array<i64: 1>, scalar_prefetch = 0 : i64, scratch_operands = 0 : i64, tpu.core_type = #tpu.core_type<tc>, window_params = [{transform_indices = @transform_0, window_bounds = array<i64: 8, 147>}, {transform_indices = @transform_1, window_bounds = array<i64: 8, 6, 60>}, {transform_indices = @transform_2, window_bounds = array<i64: 1, 8, 128>}]} {
    %c0 = arith.constant 0 : index
    %c0_0 = arith.constant 0 : index
    %0 = vector.load %arg1[%c0, %c0_0] : memref<8x147xf32, #tpu.memory_space<vmem>>, vector<8x147xf32>
    %c0_1 = arith.constant 0 : index
    %c0_2 = arith.constant 0 : index
    %c0_3 = arith.constant 0 : index
    %1 = vector.load %arg2[%c0_1, %c0_2, %c0_3] : memref<8x6x60xf32, #tpu.memory_space<vmem>>, vector<8x6x60xf32>
    %2 = vector.extract_strided_slice %0 {offsets = [0, 0], sizes = [8, 60], strides = [1, 1]} : vector<8x147xf32> to vector<8x60xf32>
    %3 = vector.extract_strided_slice %0 {offsets = [0, 60], sizes = [8, 60], strides = [1, 1]} : vector<8x147xf32> to vector<8x60xf32>
    %4 = vector.extract_strided_slice %0 {offsets = [0, 128], sizes = [8, 6], strides = [1, 1]} : vector<8x147xf32> to vector<8x6xf32>
    %5 = vector.extract_strided_slice %0 {offsets = [0, 134], sizes = [8, 6], strides = [1, 1]} : vector<8x147xf32> to vector<8x6xf32>
    %6 = vector.extract_strided_slice %0 {offsets = [0, 140], sizes = [8, 6], strides = [1, 1]} : vector<8x147xf32> to vector<8x6xf32>
    %7 = vector.extract_strided_slice %0 {offsets = [0, 146], sizes = [8, 1], strides = [1, 1]} : vector<8x147xf32> to vector<8x1xf32>
    %8 = arith.mulf %5, %5 : vector<8x6xf32>
    %9 = arith.mulf %6, %6 : vector<8x6xf32>
    %10 = arith.addf %8, %9 : vector<8x6xf32>
    %11 = math.sqrt %10 : vector<8x6xf32>
    %cst = arith.constant dense<0x7F800000> : vector<8xf32>
    %12 = vector.multi_reduction <minimumf>, %11, %cst [1] : vector<8x6xf32> to vector<8xf32>
    %13 = vector.shape_cast %12 : vector<8xf32> to vector<8x1xf32>
    %14 = tpu.iota {dimensions = array<i32: 1>} : vector<8x6xi32>
    %15 = vector.broadcast %13 : vector<8x1xf32> to vector<8x6xf32>
    %16 = arith.cmpf oeq, %11, %15 : vector<8x6xf32>
    %c6_i32 = arith.constant 6 : i32
    %17 = vector.broadcast %c6_i32 : i32 to vector<8x6xi32>
    %18 = arith.select %16, %14, %17 : vector<8x6xi1>, vector<8x6xi32>
    %cst_4 = arith.constant dense<2147483647> : vector<8xi32>
    %19 = vector.multi_reduction <minsi>, %18, %cst_4 [1] : vector<8x6xi32> to vector<8xi32>
    %20 = vector.shape_cast %19 : vector<8xi32> to vector<8x1xi32>
    %21 = vector.broadcast %20 : vector<8x1xi32> to vector<8x6xi32>
    %22 = arith.cmpi eq, %14, %21 : vector<8x6xi32>
    %cst_5 = arith.constant 5.000000e-01 : f32
    %23 = vector.broadcast %cst_5 : f32 to vector<8x1xf32>
    %24 = arith.cmpf ogt, %7, %23 : vector<8x1xf32>
    %cst_6 = arith.constant 0.000000e+00 : f32
    %25 = vector.broadcast %cst_6 : f32 to vector<8x6xf32>
    %26 = arith.select %22, %4, %25 : vector<8x6xi1>, vector<8x6xf32>
    %cst_7 = arith.constant dense<0.000000e+00> : vector<8xf32>
    %27 = vector.multi_reduction <add>, %26, %cst_7 [1] : vector<8x6xf32> to vector<8xf32>
    %28 = vector.shape_cast %27 : vector<8xf32> to vector<8x1xf32>
    %29 = vector.broadcast %28 : vector<8x1xf32> to vector<8x6xf32>
    %30 = arith.subf %29, %4 : vector<8x6xf32>
    %cst_8 = arith.constant 2.000000e+00 : f32
    %31 = vector.broadcast %cst_8 : f32 to vector<8x1xf32>
    %32 = arith.cmpf olt, %13, %31 : vector<8x1xf32>
    %33 = vector.broadcast %13 : vector<8x1xf32> to vector<8x6xf32>
    %34 = arith.subf %11, %33 : vector<8x6xf32>
    %cst_9 = arith.constant 2.000000e-01 : f32
    %35 = vector.broadcast %cst_9 : f32 to vector<8x6xf32>
    %36 = arith.cmpf ogt, %34, %35 : vector<8x6xf32>
    %37 = vector.broadcast %32 : vector<8x1xi1> to vector<8x6xi1>
    %38 = arith.andi %37, %36 : vector<8x6xi1>
    %39 = vector.broadcast %24 : vector<8x1xi1> to vector<8x6xi1>
    %40 = arith.andi %38, %39 : vector<8x6xi1>
    %cst_10 = arith.constant 2.000000e-01 : f32
    %41 = vector.broadcast %cst_10 : f32 to vector<8x6xf32>
    %42 = arith.cmpf olt, %30, %41 : vector<8x6xf32>
    %43 = arith.andi %40, %42 : vector<8x6xi1>
    %44 = arith.extui %43 : vector<8x6xi1> to vector<8x6xi32>
    %45 = arith.sitofp %44 : vector<8x6xi32> to vector<8x6xf32>
    %46 = vector.shape_cast %45 : vector<8x6xf32> to vector<1x8x6xf32>
    %cst_11 = arith.constant dense<0.000000e+00> : vector<1xf32>
    %47 = vector.multi_reduction <add>, %46, %cst_11 [1, 2] : vector<1x8x6xf32> to vector<1xf32>
    %48 = vector.shape_cast %47 : vector<1xf32> to vector<1x1x1xf32>
    %49 = vector.extract %48[0, 0, 0] : f32 from vector<1x1x1xf32>
    %cst_12 = arith.constant 2.000000e-01 : f32
    %50 = arith.mulf %cst_12, %49 : f32
    %cst_13 = arith.constant 0.000000e+00 : f32
    %51 = vector.broadcast %cst_13 : f32 to vector<8x6xf32>
    %52 = arith.select %43, %30, %51 : vector<8x6xi1>, vector<8x6xf32>
    %53 = vector.shape_cast %52 : vector<8x6xf32> to vector<1x8x6xf32>
    %cst_14 = arith.constant dense<0.000000e+00> : vector<1xf32>
    %54 = vector.multi_reduction <add>, %53, %cst_14 [1, 2] : vector<1x8x6xf32> to vector<1xf32>
    %55 = vector.shape_cast %54 : vector<1xf32> to vector<1x1x1xf32>
    %56 = vector.extract %55[0, 0, 0] : f32 from vector<1x1x1xf32>
    %57 = arith.subf %50, %56 : f32
    %cst_15 = arith.constant 1.000000e+00 : f32
    %58 = arith.mulf %cst_15, %57 : f32
    %59 = vector.shape_cast %2 : vector<8x60xf32> to vector<8x1x60xf32>
    %60 = vector.broadcast %59 : vector<8x1x60xf32> to vector<8x6x60xf32>
    %61 = arith.subf %1, %60 : vector<8x6x60xf32>
    %62 = math.absf %61 : vector<8x6x60xf32>
    %cst_16 = arith.constant 1.000000e+00 : f32
    %63 = vector.broadcast %cst_16 : f32 to vector<8x6x60xf32>
    %64 = arith.cmpf olt, %62, %63 : vector<8x6x60xf32>
    %cst_17 = arith.constant 5.000000e-01 : f32
    %65 = vector.broadcast %cst_17 : f32 to vector<8x6x60xf32>
    %66 = arith.mulf %65, %62 : vector<8x6x60xf32>
    %67 = arith.mulf %66, %62 : vector<8x6x60xf32>
    %cst_18 = arith.constant 5.000000e-01 : f32
    %68 = vector.broadcast %cst_18 : f32 to vector<8x6x60xf32>
    %69 = arith.subf %62, %68 : vector<8x6x60xf32>
    %70 = arith.select %64, %67, %69 : vector<8x6x60xi1>, vector<8x6x60xf32>
    %71 = vector.shape_cast %3 : vector<8x60xf32> to vector<8x1x60xf32>
    %72 = vector.broadcast %71 : vector<8x1x60xf32> to vector<8x6x60xf32>
    %73 = arith.mulf %70, %72 : vector<8x6x60xf32>
    %cst_19 = arith.constant dense<0.000000e+00> : vector<8x6xf32>
    %74 = vector.multi_reduction <add>, %73, %cst_19 [2] : vector<8x6x60xf32> to vector<8x6xf32>
    %cst_20 = arith.constant 0.000000e+00 : f32
    %75 = vector.broadcast %cst_20 : f32 to vector<8x6xf32>
    %76 = arith.select %22, %74, %75 : vector<8x6xi1>, vector<8x6xf32>
    %77 = vector.shape_cast %76 : vector<8x6xf32> to vector<1x8x6xf32>
    %cst_21 = arith.constant dense<0.000000e+00> : vector<1xf32>
    %78 = vector.multi_reduction <add>, %77, %cst_21 [1, 2] : vector<1x8x6xf32> to vector<1xf32>
    %79 = vector.shape_cast %78 : vector<1xf32> to vector<1x1x1xf32>
    %80 = vector.extract %79[0, 0, 0] : f32 from vector<1x1x1xf32>
    %81 = vector.shape_cast %3 : vector<8x60xf32> to vector<1x8x60xf32>
    %cst_22 = arith.constant dense<0.000000e+00> : vector<1xf32>
    %82 = vector.multi_reduction <add>, %81, %cst_22 [1, 2] : vector<1x8x60xf32> to vector<1xf32>
    %83 = vector.shape_cast %82 : vector<1xf32> to vector<1x1x1xf32>
    %84 = vector.extract %83[0, 0, 0] : f32 from vector<1x1x1xf32>
    %cst_23 = arith.constant 5.000000e-01 : f32
    %85 = arith.mulf %cst_23, %84 : f32
    %86 = tpu.iota {dimensions = array<i32: 1>} : vector<8x128xi32>
    %87 = tpu.iota {dimensions = array<i32: 0>} : vector<8x128xi32>
    %c0_i32 = arith.constant 0 : i32
    %88 = vector.broadcast %c0_i32 : i32 to vector<8x128xi32>
    %89 = arith.cmpi eq, %86, %88 : vector<8x128xi32>
    %c1_i32 = arith.constant 1 : i32
    %90 = vector.broadcast %c1_i32 : i32 to vector<8x128xi32>
    %91 = arith.cmpi eq, %86, %90 : vector<8x128xi32>
    %c2_i32 = arith.constant 2 : i32
    %92 = vector.broadcast %c2_i32 : i32 to vector<8x128xi32>
    %93 = arith.cmpi eq, %86, %92 : vector<8x128xi32>
    %c3_i32 = arith.constant 3 : i32
    %94 = vector.broadcast %c3_i32 : i32 to vector<8x128xi32>
    %95 = arith.cmpi eq, %86, %94 : vector<8x128xi32>
    %cst_24 = arith.constant 0.000000e+00 : f32
    %96 = vector.broadcast %85 : f32 to vector<8x128xf32>
    %97 = vector.broadcast %cst_24 : f32 to vector<8x128xf32>
    %98 = arith.select %95, %96, %97 : vector<8x128xi1>, vector<8x128xf32>
    %99 = vector.broadcast %80 : f32 to vector<8x128xf32>
    %100 = arith.select %93, %99, %98 : vector<8x128xi1>, vector<8x128xf32>
    %101 = vector.broadcast %49 : f32 to vector<8x128xf32>
    %102 = arith.select %91, %101, %100 : vector<8x128xi1>, vector<8x128xf32>
    %103 = vector.broadcast %58 : f32 to vector<8x128xf32>
    %104 = arith.select %89, %103, %102 : vector<8x128xi1>, vector<8x128xf32>
    %c0_i32_25 = arith.constant 0 : i32
    %105 = vector.broadcast %c0_i32_25 : i32 to vector<8x128xi32>
    %106 = arith.cmpi eq, %87, %105 : vector<8x128xi32>
    %cst_26 = arith.constant 0.000000e+00 : f32
    %107 = vector.broadcast %cst_26 : f32 to vector<8x128xf32>
    %108 = arith.select %106, %104, %107 : vector<8x128xi1>, vector<8x128xf32>
    %109 = vector.shape_cast %108 : vector<8x128xf32> to vector<1x8x128xf32>
    %c0_27 = arith.constant 0 : index
    %c0_28 = arith.constant 0 : index
    %c0_29 = arith.constant 0 : index
    %110 = vector.load %arg3[%c0_27, %c0_28, %c0_29] : memref<1x8x128xf32, #tpu.memory_space<vmem>>, vector<1x8x128xf32>
    tpu.vector_store %arg3[%c0_27, %c0_28, %c0_29], %109 {strides = array<i32>} : memref<1x8x128xf32, #tpu.memory_space<vmem>>, vector<1x8x128xf32>,
    return
  }
  func.func @transform_0(%arg0: i32) -> (i32, i32) {
    %c0_i32 = arith.constant 0 : i32
    %c0_i32_0 = arith.constant 0 : i32
    return %arg0, %c0_i32 : i32, i32
  }
  func.func @transform_1(%arg0: i32) -> (i32, i32, i32) {
    %c0_i32 = arith.constant 0 : i32
    %c0_i32_0 = arith.constant 0 : i32
    %c0_i32_1 = arith.constant 0 : i32
    return %arg0, %c0_i32, %c0_i32_0 : i32, i32, i32
  }
  func.func @transform_2(%arg0: i32) -> (i32, i32, i32) {
    %c0_i32 = arith.constant 0 : i32
    %c0_i32_0 = arith.constant 0 : i32
    %c0_i32_1 = arith.constant 0 : i32
    return %arg0, %c0_i32, %c0_i32_0 : i32, i32, i32
  }
}

</mosaic_0001>

<bundles_post_ra>
// kernel: tpu_custom_call.1
= control target key start
LH: loop header
LB: loop body
LE: loop exit
PB: predicated region body
PF: predicated region fallthrough
CT: control target
= control target key end

     0   :  { %s570_s0 = inlined_call_operand.vmem [shape: f32[8,147], index: 0, kind: input, shape index: {}]   ;;  %s571_s1 = inlined_call_operand.vmem [shape: f32[8,6,60], index: 1, kind: input, shape index: {}]   ;;  %s572_s2 = inlined_call_operand.hbm [shape: f32[1,8,128], index: 2, kind: output, shape index: {}]  }
   0x1   :  { %v434_v0 = vld [vmem:[%s570_s0 + $0x8] sm:$0xff] }
   0x2   :  { %7 = vsyncpa [#allocation3], 0  ;;  %v22_v1 = vmul.f32 %v434_v0, %v434_v0  ;;  %s409_s11 = smov 122   ;;  %v44_v2 = vlaneseq  ;;  %s410_s12 = smov 6   ;;  %vm40_vm1 = vcmask 97328   ;;  %v451_v17 = vld [vmem:[%s570_s0] sm:$0xff] }
   0x3   :  { %v136_v18 = vperm.slane %v451_v17, 0  ;;  %s411_s15 = smov 68   ;;  %v129_v19 = vrot.slane %v451_v17, 1  ;;  %v130_v21 = vrot.slane %v451_v17, 2  ;;  %v133_v23 = vrot.slane %v451_v17, 5  ;;  %s415_s9 = smov [#allocation2]  }
   0x4   :  { %24 = vrot.lane.b32.xlu0 %v22_v1, %s409_s11  ;;  %v440_v3 = vand.u32 127, %v44_v2  ;;  %v131_v27 = vrot.slane %v451_v17, 3  ;;  %v132_v33 = vrot.slane %v451_v17, 4  ;;  %v14_v35 = vld [vmem:[%s571_s1] sm:$0x3f]  ;;  %v135_v41 = vrot.slane %v451_v17, 7 }
   0x5   :  { %208 = vrot.lane.b32.xlu2 %v136_v18, %s411_s15  ;;  %v137_v20 = vperm.slane %v129_v19, 0  ;;  %v138_v22 = vperm.slane %v130_v21, 0  ;;  %v460_v25 = vperm.slane %v133_v23, 0  ;;  %v15_v36 = vld [vmem:[%s571_s1 + $0x8] sm:$0x3f]  ;;  %v152_v37 = vsub.f32 %v14_v35, %v136_v18  ;;  %s344_s10 = sshll.u32 %s415_s9, 4  ;;  %s345_s10 = int_to_ptr.vmem [resolvable:$true] %s344_s10 }
   0x6   :  { %47 = vrot.lane.b32.xlu1 %v440_v3, %s410_s12  ;;  %v470_v30 = vperm.slane %v131_v27, 0  ;;  %v475_v34 = vperm.slane %v132_v33, 0  ;;  %v486_v45 = vperm.slane %v135_v41, 0  ;;  %vm240_vm6 = vcmask 488448   ;;  %v16_v56 = vld [vmem:[%s571_s1 + $0x10] sm:$0x3f] }
   0x7   :  { %v153_v38 = vsub.f32 %v15_v36, %v137_v20  ;;  %v160_v39 = vand.u32 2147483647, %v152_v37  ;;  %v154_v57 = vsub.f32 %v16_v56, %v138_v22  ;;  %vm68_vm9 = vcmask 48128   ;;  %s346_s13 = sshll.u32 %s572_s2, 4  ;;  %s347_s13 = int_to_ptr.hbm [resolvable:$true] %s346_s13 }
   0x8   :  { %vm66_vm11 = vcmp.gt.f32.partialorder %v434_v0, 0.5 }
   0x9   :  { %v161_v40 = vand.u32 2147483647, %v153_v38  ;;  %v176_v43 = vmul.f32 0.5, %v160_v39  ;;  %v356_v44 = vadd.f32 -0.5, %v160_v39  ;;  %vm168_vm4 = vcmp.lt.f32.partialorder %v160_v39, 1.0 }
   0xa   :  { %v162_v58 = vand.u32 2147483647, %v154_v57 }
   0xb   :  { %v177_v46 = vmul.f32 0.5, %v161_v40  ;;  %v184_v47 = vmul.f32 %v176_v43, %v160_v39  ;;  %v357_v48 = vadd.f32 -0.5, %v161_v40  ;;  %vm169_vm5 = vcmp.lt.f32.partialorder %v161_v40, 1.0 }
   0xc   :  { %v178_v60 = vmul.f32 0.5, %v162_v58  ;;  %vm170_vm8 = vcmp.lt.f32.partialorder %v162_v58, 1.0 }
   0xd   :  { %210 = vrot.lane.b32.xlu2 %v137_v20, %s411_s15  ;;  %v185_v49 = vmul.f32 %v177_v46, %v161_v40  ;;  %v200_v50 = vsel %vm168_vm4, %v184_v47, %v356_v44  ;;  %v20_v40 = vld [vmem:[%s571_s1 + $0x30] sm:$0x3f] }
   0xf   :  { %v201_v52 = vsel %vm169_vm5, %v185_v49, %v357_v48 }
  0x15   :  { %212 = vrot.lane.b32.xlu2 %v138_v22, %s411_s15  ;;  %v18_v22 = vld [vmem:[%s571_s1 + $0x20] sm:$0x3f] }
  0x16   :  { %v156_v23 = vsub.f32 %v18_v22, %v475_v34 }
  0x1d   :  { %218 = vrot.lane.b32.xlu2 %v460_v25, %s411_s15 }
  0x5f   :  { %v209_v42 = vpop.permute.xlu2 %208 }
  0x60   :  { %v490_v51 = vmul.f32 %v209_v42, %v200_v50 }
  0x62   :  { %v241_v48 = vsel %vm240_vm6, %v490_v51, 0.0 }
  0x67   :  { %v211_v53 = vpop.permute.xlu2 %210 }
  0x68   :  { %v233_v54 = vmul.f32 %v211_v53, %v201_v52 }
  0x6a   :  { %v244_v55 = vsel %vm240_vm6, %v233_v54, 0.0 }
  0x76   :  { %v25_v4 = vpop.permute.xlu0 %24 }
  0x77   :  { %v27_v5 = vadd.f32 %v25_v4, %v22_v1  ;;  %v186_v1 = vmul.f32 %v178_v60, %v162_v58  ;;  %v358_v4 = vadd.f32 -0.5, %v162_v58 }
  0x78   :  { %v48_v24 = vpop.permute.xlu1 %47 }
  0x79   :  { %381 = vrsqrt.f32 %v27_v5  ;;  %vm35_vm0 = vcmp.eq.f32.partialorder %v27_v5, inf  ;;  %v38_v13 = vand.u32 2147483648, %v27_v5  ;;  %vm37_vm2 = vcmp.eq.f32.partialorder %v27_v5, 0.0 }
  0x7f   :  { %v382_v6 = vpop.eup %381 }
  0x80   :  { %v29_v7 = vmul.f32 %v382_v6, %v27_v5 }
  0x82   :  { %v30_v8 = vmul.f32 %v382_v6, %v29_v7 }
  0x84   :  { %v31_v9 = vmul.f32 0.5, %v30_v8 }
  0x86   :  { %v32_v10 = vsub.f32 1.5, %v31_v9  ;;  %v134_v9 = vrot.slane %v451_v17, 6 }
  0x88   :  { %v33_v11 = vmul.f32 %v382_v6, %v32_v10  ;;  %v213_v6 = vpop.permute.xlu2 %212  ;;  %v142_v10 = vperm.slane %v134_v9, 0 }
  0x8a   :  { %v34_v12 = vmul.f32 %v33_v11, %v27_v5  ;;  %v412_v11 = vmov 18   ;;  %v158_v42 = vsub.f32 %v20_v40, %v142_v10 }
  0x8b   :  { %379 = vset.pattern.permute.xlu2 %v412_v11  ;;  %380 = vset.pattern.permute.xlu0 %v412_v11 }
  0x8c   :  { %v36_v14 = vsel %vm35_vm0, %v27_v5, %v34_v12  ;;  %v202_v5 = vsel %vm170_vm8, %v186_v1, %v358_v4  ;;  %v166_v46 = vand.u32 2147483647, %v158_v42 }
  0x8d   :  { %v444_v15 = vsel %vm37_vm2, %v38_v13, %v36_v14  ;;  %v234_v7 = vmul.f32 %v213_v6, %v202_v5 }
  0x8e   :  { %v41_v16 = vsel %vm40_vm1, %v444_v15, inf  ;;  %v182_v50 = vmul.f32 0.5, %v166_v46  ;;  %v362_v53 = vadd.f32 -0.5, %v166_v46  ;;  %vm174_vm14 = vcmp.lt.f32.partialorder %v166_v46, 1.0 }
  0x8f   :  { %42 = vmin.xlane.f32.xlu0 %v41_v16  ;;  %v247_v8 = vsel %vm240_vm6, %v234_v7, 0.0 }
  0x90   :  { %v499_v12 = vpop.permute.xlu2 %218 }
  0xa3   :  { %214 = vrot.lane.b32.xlu0 %v470_v30, %s411_s15 }
  0xab   :  { %222 = vrot.lane.b32.xlu0 %v486_v45, %s411_s15 }
  0xd5   :  { %248 = vadd.xlane.f32.xlu0 %v247_v8 }
 0x102   :  { %v462_v26 = vpop.xlane.xlu0 %42 }
 0x103   :  { %vm46_vm3 = vcmp.eq.f32.partialorder %v444_v15, %v462_v26  ;;  %v74_v22 = vsub.f32 %v444_v15, %v462_v26  ;;  %vm73_vm4 = vcmp.lt.f32.partialorder %v462_v26, 2.0 }
 0x104   :  { %v49_v28 = vsel %vm46_vm3, %v48_v24, 6  ;;  %v413_v24 = vmov 0  }
 0x105   :  { %v50_v29 = vsel %vm40_vm1, %v49_v28, 2147483647  ;;  %v79_v27 = vsel %vm66_vm11, 1, %v413_v24  ;;  %v164_v28 = vand.u32 2147483647, %v156_v23  ;;  %vm281_vm11 = vcmask 1041409  }
 0x106   :  { %v52_v31 = vshra.s32 %v50_v29, 16  ;;  %v51_v59 = vand.u32 65535, %v50_v29  ;;  %vm75_vm2 = vcmp.gt.f32.partialorder %v74_v22, 0.2 }
 0x107   :  { %v180_v29 = vmul.f32 0.5, %v164_v28  ;;  %vm172_vm12 = vcmp.lt.f32.partialorder %v164_v28, 1.0  ;;  %vm78_vm5 = vmand %vm73_vm4, %vm75_vm2  ;;  %vm310_vm2 = vcmask 490496   ;;  %vm324_vm4 = vcmp.eq.s32.totalorder %v440_v3, 0 }
 0x108   :  { %v54_v32 = vcvt.s32.f32 %v52_v31  ;;  %v53_v62 = vcvt.s32.f32 %v51_v59 }
 0x109   :  { %v188_v31 = vmul.f32 %v180_v29, %v164_v28  ;;  %v414_v29 = vmov 0.0  }
 0x10a   :  { %55 = vmin.xlane.f32.xlu1 %v54_v32 }
 0x115   :  { %v215_v49 = vpop.permute.xlu0 %214 }
 0x123   :  { %216 = vrot.lane.b32.xlu1 %v475_v34, %s411_s15  ;;  %v17_v34 = vld [vmem:[%s571_s1 + $0x18] sm:$0x3f] }
 0x124   :  { %v155_v38 = vsub.f32 %v17_v34, %v470_v30  ;;  %v190_v30 = vmul.f32 %v182_v50, %v166_v46 }
 0x126   :  { %v163_v39 = vand.u32 2147483647, %v155_v38 }
 0x128   :  { %v179_v41 = vmul.f32 0.5, %v163_v39  ;;  %v359_v44 = vadd.f32 -0.5, %v163_v39  ;;  %vm171_vm13 = vcmp.lt.f32.partialorder %v163_v39, 1.0 }
 0x12a   :  { %v187_v43 = vmul.f32 %v179_v41, %v163_v39 }
 0x12c   :  { %v203_v47 = vsel %vm171_vm13, %v187_v43, %v359_v44  ;;  %vm285_vm13 = vcmask 1043459  }
 0x12d   :  { %v235_v52 = vmul.f32 %v215_v49, %v203_v47 }
 0x12f   :  { %v250_v54 = vsel %vm240_vm6, %v235_v52, 0.0 }
 0x14d   :  { %245 = vadd.xlane.f32.xlu1 %v244_v55  ;;  %v206_v55 = vsel %vm174_vm14, %v190_v30, %v362_v53  ;;  %vm287_vm14 = vcmask 1044484  }
 0x17d   :  { %v56_v61 = vpop.xlane.xlu1 %55 }
 0x17e   :  { %vm57_vm7 = vcmp.eq.f32.partialorder %v54_v32, %v56_v61  ;;  %v62_v13 = vcvt.f32.s32 %v56_v61  ;;  %v360_v32 = vadd.f32 -0.5, %v164_v28  ;;  %v19_v61 = vld [vmem:[%s571_s1 + $0x28] sm:$0x3f] }
 0x17f   :  { %v58_v63 = vsel %vm57_vm7, %v53_v62, inf  ;;  %v21_v62 = vld [vmem:[%s571_s1 + $0x38] sm:$0x3f] }
 0x180   :  { %59 = vmin.xlane.f32.xlu2 %v58_v63  ;;  %v63_v16 = vshll.u32 %v62_v13, 16  ;;  %v204_v33 = vsel %vm172_vm12, %v188_v31, %v360_v32  ;;  %v157_v63 = vsub.f32 %v19_v61, %v460_v25  ;;  %v159_v1 = vsub.f32 %v21_v62, %v486_v45 }
 0x181   :  { %vm283_vm12 = vcmask 1042434  }
 0x182   :  { %v165_v4 = vand.u32 2147483647, %v157_v63 }
 0x184   :  { %v181_v5 = vmul.f32 0.5, %v165_v4  ;;  %v361_v8 = vadd.f32 -0.5, %v165_v4  ;;  %vm173_vm0 = vcmp.lt.f32.partialorder %v165_v4, 1.0 }
 0x186   :  { %v189_v7 = vmul.f32 %v181_v5, %v165_v4 }
 0x188   :  { %v205_v11 = vsel %vm173_vm0, %v189_v7, %v361_v8  ;;  %vm291_vm0 = vcmask 1046534  }
 0x195   :  { %v217_v35 = vpop.permute.xlu1 %216 }
 0x196   :  { %v236_v36 = vmul.f32 %v217_v35, %v204_v33 }
 0x198   :  { %220 = vrot.lane.b32.xlu2 %v142_v10, %s411_s15  ;;  %v253_v37 = vsel %vm240_vm6, %v236_v36, 0.0 }
 0x199   :  { %254 = vadd.xlane.f32.xlu1 %v253_v37 }
 0x1f3   :  { %v60_v14 = vpop.xlane.xlu2 %59 }
 0x1f4   :  { %v61_v18 = vcvt.f32.s32 %v60_v14  ;;  %v223_v14 = vpop.permute.xlu0 %222 }
 0x1f6   :  { %v501_v19 = vadd.s32 %v63_v16, %v61_v18  ;;  %v237_v16 = vmul.f32 %v499_v12, %v205_v11 }
 0x1f8   :  { %vm65_vm10 = vcmp.eq.s32.totalorder %v440_v3, %v501_v19  ;;  %v256_v25 = vsel %vm240_vm6, %v237_v16, 0.0 }
 0x1f9   :  { %v67_v20 = vsel %vm65_vm10, %v434_v0, 0.0 }
 0x1fa   :  { %v69_v21 = vsel %vm68_vm9, %v67_v20, 0.0  ;;  %v246_v20 = vpop.xlane.xlu1 %245 }
 0x1fb   :  { %70 = vadd.xlane.f32.xlu2 %v69_v21  ;;  %v221_v56 = vpop.permute.xlu2 %220  ;;  %v274_v26 = vperm.slane %v246_v20, %v440_v3 }
 0x1fc   :  { %v238_v57 = vmul.f32 %v221_v56, %v206_v55  ;;  %v249_v23 = vpop.xlane.xlu0 %248 }
 0x1fd   :  { %v275_v36 = vperm.slane %v249_v23, %v440_v3 }
 0x1fe   :  { %v259_v58 = vsel %vm240_vm6, %v238_v57, 0.0 }
 0x20c   :  { %v255_v21 = vpop.xlane.xlu1 %254 }
 0x20d   :  { %v277_v34 = vperm.slane %v255_v21, %v440_v3 }
 0x213   :  { %81 = vperm.xlu2 %379, %v79_v27  }
 0x23c   :  { %242 = vadd.xlane.f32.xlu2 %v241_v48 }
 0x244   :  { %251 = vadd.xlane.f32.xlu2 %v250_v54 }
 0x24c   :  { %260 = vadd.xlane.f32.xlu2 %v259_v58 }
 0x26e   :  { %v71_v59 = vpop.xlane.xlu2 %70 }
 0x26f   :  { %v72_v60 = vsub.f32 %v71_v59, %v434_v0  ;;  %v167_v0 = vand.u32 2147483647, %v159_v1 }
 0x271   :  { %vm85_vm15 = vcmp.lt.f32.partialorder %v72_v60, 0.2  ;;  %109 = vrot.lane.b32.xlu0 %v72_v60, %s410_s12  ;;  %v183_v6 = vmul.f32 0.5, %v167_v0  ;;  %v363_v10 = vadd.f32 -0.5, %v167_v0  ;;  %vm175_vm1 = vcmp.lt.f32.partialorder %v167_v0, 1.0 }
 0x272   :  { %v86_v51 = vsel %vm85_vm15, 1, %v413_v24  ;;  %vm289_vm15 = vcmask 1045509  }
 0x273   :  { %87 = vrot.lane.b32.xlu1 %v86_v51, %s410_s12  ;;  %v191_v9 = vmul.f32 %v183_v6, %v167_v0 }
 0x275   :  { %v207_v13 = vsel %vm175_vm1, %v191_v9, %v363_v10  ;;  %vm293_vm1 = vcmask 1047559  }
 0x276   :  { %v239_v18 = vmul.f32 %v223_v14, %v207_v13  ;;  %v82_v24 = vpop.permute.xlu2 %81 }
 0x277   :  { %vm83_vm3 = vcmp.eq.s32.totalorder %v82_v24, 1  ;;  %v323_v24 = vshrl.u32 %v44_v2, 7 }
 0x278   :  { %v262_v45 = vsel %vm240_vm6, %v239_v18, 0.0  ;;  %vm84_vm7 = vmand %vm78_vm5, %vm83_vm3  ;;  %vm325_vm3 = vcmp.eq.s32.totalorder %v440_v3, 1 }
 0x279   :  { %vm336_vm5 = vcmp.eq.s32.totalorder %v323_v24, 0 }
 0x29b   :  { %257 = vadd.xlane.f32.xlu0 %v256_v25 }
 0x29d   :  { %263 = vadd.xlane.f32.xlu1 %v262_v45 }
 0x2af   :  { %v243_v15 = vpop.xlane.xlu2 %242 }
 0x2b0   :  { %v273_v32 = vperm.slane %v243_v15, %v440_v3 }
 0x2b2   :  { %v282_v33 = vsel %vm281_vm11, %v274_v26, %v273_v32 }
 0x2b3   :  { %v284_v37 = vsel %vm283_vm12, %v275_v36, %v282_v33 }
 0x2b6   :  { %307 = vrot.lane.b32.xlu1 %v451_v17, %s411_s15 }
 0x2b7   :  { %v252_v31 = vpop.xlane.xlu2 %251 }
 0x2b8   :  { %v276_v35 = vperm.slane %v252_v31, %v440_v3 }
 0x2ba   :  { %v286_v38 = vsel %vm285_vm13, %v276_v35, %v284_v37 }
 0x2bb   :  { %v288_v42 = vsel %vm287_vm14, %v277_v34, %v286_v38 }
 0x2bf   :  { %v261_v39 = vpop.xlane.xlu2 %260 }
 0x2c0   :  { %v279_v43 = vperm.slane %v261_v39, %v440_v3 }
 0x2e3   :  { %v110_v27 = vpop.permute.xlu0 %109 }
 0x2e5   :  { %v88_v12 = vpop.permute.xlu1 %87 }
 0x2e6   :  { %vm89_vm6 = vcmp.ne.s32.totalorder %v88_v12, 0 }
 0x2e7   :  { %vm90_vm8 = vmand %vm84_vm7, %vm89_vm6 }
 0x2e8   :  { %v112_v28 = vsel %vm90_vm8, %v110_v27, 0.0  ;;  %v355_v17 = vsel %vm90_vm8, 1.0, %v414_v29 }
 0x2e9   :  { %114 = vrot.lane.b32.xlu2 %v112_v28, %s409_s11  ;;  %94 = vrot.lane.b32.xlu0 %v355_v17, %s409_s11 }
 0x30e   :  { %v258_v40 = vpop.xlane.xlu0 %257 }
 0x30f   :  { %v278_v41 = vperm.slane %v258_v40, %v440_v3 }
 0x310   :  { %v264_v44 = vpop.xlane.xlu1 %263 }
 0x311   :  { %v290_v46 = vsel %vm289_vm15, %v278_v41, %v288_v42  ;;  %v280_v47 = vperm.slane %v264_v44, %v440_v3 }
 0x312   :  { %v292_v48 = vsel %vm291_vm0, %v279_v43, %v290_v46 }
 0x313   :  { %v294_v49 = vsel %vm293_vm1, %v280_v47, %v292_v48 }
 0x314   :  { %v296_v50 = vsel %vm65_vm10, %v294_v49, 0.0  ;;  %vm326_vm10 = vcmp.eq.s32.totalorder %v440_v3, 2 }
 0x315   :  { %v297_v52 = vsel %vm68_vm9, %v296_v50, 0.0 }
 0x316   :  { %298 = vadd.xlane.f32.xlu1 %v297_v52 }
 0x328   :  { %v308_v56 = vpop.permute.xlu1 %307 }
 0x329   :  { %v311_v57 = vsel %vm310_vm2, %v308_v56, 0.0 }
 0x343   :  { %v115_v30 = vpop.permute.xlu2 %114 }
 0x344   :  { %v117_v53 = vsel %vm68_vm9, %v115_v30, 0.0 }
 0x345   :  { %118 = vadd.xlane.f32.xlu2 %v117_v53 }
 0x35b   :  { %v95_v54 = vpop.permute.xlu0 %94 }
 0x35c   :  { %v97_v55 = vsel %vm68_vm9, %v95_v54, 0.0  ;;  %vm327_vm9 = vcmp.eq.s32.totalorder %v440_v3, 3 }
 0x35d   :  { %98 = vadd.xlane.f32.xlu0 %v97_v55 }
 0x365   :  { %312 = vadd.xlane.f32.xlu0 %v311_v57 }
 0x389   :  { %v299_v59 = vpop.xlane.xlu1 %298 }
 0x38a   :  { %v300_v19 = vrot.slane %v299_v59, 4 }
 0x38c   :  { %v301_v61 = vadd.f32 %v300_v19, %v299_v59 }
 0x38e   :  { %v302_v1 = vrot.slane %v301_v61, 2 }
 0x390   :  { %v303_v6 = vadd.f32 %v302_v1, %v301_v61 }
 0x392   :  { %v304_v14 = vrot.slane %v303_v6, 1 }
 0x394   :  { %v305_v20 = vadd.f32 %v304_v14, %v303_v6 }
 0x3b8   :  { %v119_v58 = vpop.xlane.xlu2 %118 }
 0x3b9   :  { %v120_v60 = vrot.slane %v119_v58, 4 }
 0x3bb   :  { %v121_v51 = vadd.f32 %v120_v60, %v119_v58 }
 0x3bd   :  { %v122_v62 = vrot.slane %v121_v51, 2 }
 0x3bf   :  { %v123_v5 = vadd.f32 %v122_v62, %v121_v51 }
 0x3c1   :  { %v124_v10 = vrot.slane %v123_v5, 1 }
 0x3c3   :  { %v125_v25 = vadd.f32 %v124_v10, %v123_v5 }
 0x3d0   :  { %v99_v63 = vpop.xlane.xlu0 %98 }
 0x3d1   :  { %v100_v4 = vrot.slane %v99_v63, 4 }
 0x3d3   :  { %v101_v0 = vadd.f32 %v100_v4, %v99_v63 }
 0x3d5   :  { %v102_v7 = vrot.slane %v101_v0, 2 }
 0x3d7   :  { %v103_v8 = vadd.f32 %v102_v7, %v101_v0 }
 0x3d8   :  { %v313_v9 = vpop.xlane.xlu0 %312 }
 0x3d9   :  { %v314_v11 = vrot.slane %v313_v9, 4  ;;  %v104_v13 = vrot.slane %v103_v8, 1 }
 0x3db   :  { %v315_v16 = vadd.f32 %v314_v11, %v313_v9  ;;  %v105_v18 = vadd.f32 %v104_v13, %v103_v8 }
 0x3dd   :  { %v316_v45 = vrot.slane %v315_v16, 2  ;;  %364 = vpush %v105_v18 }
 0x3de   :  { %366 = vpush %v125_v25 }
 0x3df   :  { %v317_v21 = vadd.f32 %v316_v45, %v315_v16  ;;  %368 = vpush %v305_v20 }
 0x3e1   :  { %v318_v22 = vrot.slane %v317_v21, 1 }
 0x3e3   :  { %v319_v23 = vadd.f32 %v318_v22, %v317_v21 }
 0x3e5   :  { %370 = vpush %v319_v23 }
 0x40e   :  { %s365_s1 = spop %364 }
 0x40f   :  { %s367_s3 = spop %366  ;;  %s107_s4 = smul.f32 0.2, %s365_s1  ;;  %v332_v29 = vstv %s365_s1 }
 0x410   :  { %s369_s5 = spop %368 }
 0x411   :  { %s127_s8 = ssub.f32 %s107_s4, %s367_s3  ;;  %v330_v27 = vstv %s369_s5 }
 0x413   :  { %v334_v2 = vstv %s127_s8 }
 0x416   :  { %s371_s6 = spop %370 }
 0x417   :  { %s321_s7 = smul.f32 0.5, %s371_s6 }
 0x419   :  { %v328_v12 = vstv %s321_s7 }
 0x41a   :  { %v329_v28 = vsel %vm327_vm9, %v328_v12, 0.0 }
 0x41b   :  { %v331_v17 = vsel %vm326_vm10, %v330_v27, %v329_v28 }
 0x41c   :  { %v333_v15 = vsel %vm325_vm3, %v332_v29, %v331_v17 }
 0x41d   :  { %v335_v31 = vsel %vm324_vm4, %v334_v2, %v333_v15 }
 0x41e   :  { %v337_v32 = vsel %vm336_vm5, %v335_v31, 0.0 }
 0x41f   :  { %338 = vst [vmem:[#allocation2] sm:$0xff] %v337_v32 }
 0x420   :  { %349 = dma.vmem_to_hbm [thread:$0]  %s345_s10, 128, %s347_s13, [#allocation3]  }
 0x421   :  { %407 = dma.done.wait [#allocation3], 128  }
 0x422   :  { %408 = vsyncadd [#allocation3], 4294967168 }
 0x423   :  { %354 = vsyncpa [#allocation3], 1 }

</bundles_post_ra>
